<compile_context>
chip_gen: v6e
topology: v6e:2x2x1
jax: 0.10.0
libtpu: 0.0.40
codegen_flags: <defaults>
</compile_context>

<pallas_src>
import functools

import jax
import jax.numpy as jnp
from jax.experimental import pallas as pl
from jax.experimental.pallas import tpu as pltpu

N_OUT = 33     # true classifier width
LANE = 128     # lane-padded output width (multiple of 128 => unmasked vst + dense DMA)


def _round_up(x, m):
    return (x + m - 1) // m * m


def mlp_kernel(x_ref, w1_ref, b1_ref, w2_ref, b2_ref, w3_ref, b3_ref, o_ref):
    # Matmuls run in the weights' dtype (f32 or bf16) with f32 accumulation on the MXU.
    # Bias adds / ReLU stay in f32 (v5e VPU has no bf16 arithmetic path).
    cdt = w1_ref.dtype
    x = x_ref[...].astype(cdt)

    h1 = jnp.dot(x, w1_ref[...], preferred_element_type=jnp.float32)
    h1 = jnp.maximum(h1 + b1_ref[...], 0.0)

    h2 = jnp.dot(h1.astype(cdt), w2_ref[...], preferred_element_type=jnp.float32)
    h2 = jnp.maximum(h2 + b2_ref[...], 0.0)

    out = jnp.dot(h2.astype(cdt), w3_ref[...], preferred_element_type=jnp.float32)
    # f32 -> o_ref.dtype (possibly bf16) cast on store is a pure format conversion.
    o_ref[...] = (out + b3_ref[...]).astype(o_ref.dtype)


def prepare_params(params, compute_dtype=jnp.float32):
    """One-time re-layout of PyTorch-style params:
       weights -> (in, out) in compute_dtype; biases -> (1, out) rows in f32;
       final layer zero-padded from 33 to 128 output columns.
       Use compute_dtype=bf16 only as a VMEM/DMA lever for large latent — at small
       latent the weights are fetched once, so it is neutral (and it also quantizes
       the activations inside the kernel)."""
    w1t = params["w1"].T.astype(compute_dtype)
    w2t = params["w2"].T.astype(compute_dtype)
    w3t = params["w3"].T.astype(jnp.float32)          # (latent//4, 33)

    d3 = w3t.shape[0]
    w3p = jnp.zeros((d3, LANE), jnp.float32).at[:, :N_OUT].set(w3t).astype(compute_dtype)
    b3p = jnp.zeros((1, LANE), jnp.float32).at[:, :N_OUT].set(params["b3"][None, :])

    return dict(
        w1=w1t, b1=params["b1"][None, :].astype(jnp.float32),
        w2=w2t, b2=params["b2"][None, :].astype(jnp.float32),
        w3=w3p, b3=b3p,
    )


@functools.partial(jax.jit, static_argnames=("tb", "out_dtype", "lane_padded"))
def mlp_classifier_forward(x, prepared, tb=1024, out_dtype=jnp.float32, lane_padded=False):
    """x: (B, latent_dim), f32 or bf16 (accepted natively). prepared: prepare_params()."""
    B, latent = x.shape
    w1, b1 = prepared["w1"], prepared["b1"]
    w2, b2 = prepared["w2"], prepared["b2"]
    w3, b3 = prepared["w3"], prepared["b3"]

    # Batch tile: as large as requested, but capped so the grid has >= 2 steps
    # (pipelining + v7x megacore sharding). No padding of x: Pallas masks the ragged
    # last block; garbage rows only flow through per-row matmul/ReLU and are dropped.
    tb_eff = min(_round_up(tb, 8), _round_up(pl.cdiv(B, 2), 8))
    grid = (pl.cdiv(B, tb_eff),)

    # Explicit VMEM budget: weights single-buffered (Buffered(1)), x/out double-buffered.
    weight_bytes = sum(a.size * a.dtype.itemsize for a in (w1, b1, w2, b2, w3, b3))
    io_bytes = 2 * tb_eff * (latent * x.dtype.itemsize + LANE * jnp.dtype(out_dtype).itemsize)
    vmem_limit = int(min(max(2 * weight_bytes + io_bytes + (4 << 20), 16 << 20), 48 << 20))

    const = dict(pipeline_mode=pl.Buffered(1))   # constant block index -> 1 buffer suffices

    out = pl.pallas_call(
        mlp_kernel,
        out_shape=jax.ShapeDtypeStruct((B, LANE), out_dtype),
        grid=grid,
        in_specs=[
            pl.BlockSpec((tb_eff, latent), lambda i: (i, 0)),   # x: streamed per batch tile
            pl.BlockSpec(w1.shape, lambda i: (0, 0), **const),  # weights/biases: fetched once,
            pl.BlockSpec(b1.shape, lambda i: (0, 0), **const),  # VMEM-resident across grid
            pl.BlockSpec(w2.shape, lambda i: (0, 0), **const),
            pl.BlockSpec(b2.shape, lambda i: (0, 0), **const),
            pl.BlockSpec(w3.shape, lambda i: (0, 0), **const),
            pl.BlockSpec(b3.shape, lambda i: (0, 0), **const),
        ],
        out_specs=pl.BlockSpec((tb_eff, LANE), lambda i: (i, 0)),
        compiler_params=pltpu.CompilerParams(
            dimension_semantics=("parallel",),   # v7x: shard batch tiles across 2 TCs
            vmem_limit_bytes=vmem_limit,
        ),
    )(x, w1, b1, w2, b2, w3, b3)

    if lane_padded:
        return out                 # (B, 128): logits in [:, :33], lanes 33.. are exactly 0
    return out[:, :N_OUT]


def init_params(key, latent_dim):
    """Deterministic PyTorch-style init: U(-1/sqrt(fan_in), 1/sqrt(fan_in)), (out, in) layout."""
    dims = [
        (latent_dim // 2, latent_dim),       # hidden1
        (latent_dim // 4, latent_dim // 2),  # hidden2
        (33, latent_dim // 4),               # output
    ]
    params = {}
    keys = jax.random.split(key, 2 * len(dims))
    for i, (out_f, in_f) in enumerate(dims):
        bound = 1.0 / jnp.sqrt(in_f)
        params[f"w{i+1}"] = jax.random.uniform(
            keys[2 * i], (out_f, in_f), jnp.float32, -bound, bound)
        params[f"b{i+1}"] = jax.random.uniform(
            keys[2 * i + 1], (out_f,), jnp.float32, -bound, bound)
    return params


if __name__ == "__main__":
    latent_dim = 128
    batch = 200  # not a multiple of the tile size -> exercises the ragged last grid block

    key = jax.random.PRNGKey(0)
    k_x, k_p = jax.random.split(key)
    x = jax.random.normal(k_x, (batch, latent_dim), jnp.float32)
    params = init_params(k_p, latent_dim)

    # Plain-JAX reference (same math as the PyTorch module).
    h = jnp.maximum(x @ params["w1"].T + params["b1"], 0.0)
    h = jnp.maximum(h @ params["w2"].T + params["b2"], 0.0)
    ref = h @ params["w3"].T + params["b3"]

    # 1) f32 weights, f32 output (default path): tight tolerance, 2-step parallel grid.
    prep_f32 = prepare_params(params, jnp.float32)
    out_f32 = jax.block_until_ready(mlp_classifier_forward(x, prep_f32))
    assert out_f32.shape == (batch, N_OUT)
    err_f32 = float(jnp.max(jnp.abs(out_f32 - ref)))
    assert err_f32 < 1e-4, f"f32 path max abs err {err_f32}"

    # 2) bf16 output writeback (halves output HBM bytes); weights stay f32.
    out_bf16o = jax.block_until_ready(
        mlp_classifier_forward(x, prep_f32, out_dtype=jnp.bfloat16))
    err_bf16o = float(jnp.max(jnp.abs(out_bf16o.astype(jnp.float32) - ref)))
    assert err_bf16o < 2e-2, f"bf16-output path max abs err {err_bf16o}"

    # 3) bf16 weights (VMEM/DMA lever for large latent); looser tolerance.
    prep_bf16 = prepare_params(params, jnp.bfloat16)
    out_bf16w = jax.block_until_ready(mlp_classifier_forward(x, prep_bf16))
    err_bf16w = float(jnp.max(jnp.abs(out_bf16w - ref)))
    assert err_bf16w < 5e-2, f"bf16-weight path max abs err {err_bf16w}"

    # 4) lane-padded output: skip the 128->33 slice entirely (for downstream argmax etc.).
    out_pad = jax.block_until_ready(
        mlp_classifier_forward(x, prep_f32, lane_padded=True))
    assert out_pad.shape == (batch, LANE)
    assert float(jnp.max(jnp.abs(out_pad[:, N_OUT:]))) == 0.0
    assert float(jnp.max(jnp.abs(out_pad[:, :N_OUT] - ref))) < 1e-4

    print("KERNEL_OK")
</pallas_src>

<mosaic_0001>
module attributes {stable_mosaic.version = 11 : i64} {
  func.func @mlp_kernel(%arg0: i32, %arg1: memref<104x128xf32, #tpu.memory_space<vmem>>, %arg2: memref<128x64xf32, #tpu.memory_space<vmem>>, %arg3: memref<1x64xf32, #tpu.memory_space<vmem>>, %arg4: memref<64x32xf32, #tpu.memory_space<vmem>>, %arg5: memref<1x32xf32, #tpu.memory_space<vmem>>, %arg6: memref<32x128xf32, #tpu.memory_space<vmem>>, %arg7: memref<1x128xf32, #tpu.memory_space<vmem>>, %arg8: memref<104x128xf32, #tpu.memory_space<vmem>>) attributes {dimension_semantics = [#tpu.dimension_semantics<parallel>], iteration_bounds = array<i64: 2>, scalar_prefetch = 0 : i64, scratch_operands = 0 : i64, tpu.core_type = #tpu.core_type<tc>, window_params = [{transform_indices = @transform_0, window_bounds = array<i64: 104, 128>}, {pipeline_mode = #tpu.pipeline_mode<synchronous>, transform_indices = @transform_1, window_bounds = array<i64: 128, 64>}, {pipeline_mode = #tpu.pipeline_mode<synchronous>, transform_indices = @transform_2, window_bounds = array<i64: 1, 64>}, {pipeline_mode = #tpu.pipeline_mode<synchronous>, transform_indices = @transform_3, window_bounds = array<i64: 64, 32>}, {pipeline_mode = #tpu.pipeline_mode<synchronous>, transform_indices = @transform_4, window_bounds = array<i64: 1, 32>}, {pipeline_mode = #tpu.pipeline_mode<synchronous>, transform_indices = @transform_5, window_bounds = array<i64: 32, 128>}, {pipeline_mode = #tpu.pipeline_mode<synchronous>, transform_indices = @transform_6, window_bounds = array<i64: 1, 128>}, {transform_indices = @transform_7, window_bounds = array<i64: 104, 128>}]} {
    %c0 = arith.constant 0 : index
    %c0_0 = arith.constant 0 : index
    %0 = vector.load %arg1[%c0, %c0_0] : memref<104x128xf32, #tpu.memory_space<vmem>>, vector<104x128xf32>
    %c0_1 = arith.constant 0 : index
    %c0_2 = arith.constant 0 : index
    %1 = vector.load %arg2[%c0_1, %c0_2] : memref<128x64xf32, #tpu.memory_space<vmem>>, vector<128x64xf32>
    %cst = arith.constant dense<0.000000e+00> : vector<104x64xf32>
    %2 = tpu.matmul %0, %1, %cst {dimension_numbers = #tpu.dot_dimension_numbers<[1], [0], [0], [1], [0, 0, 1, 1], [], []>} : vector<104x128xf32>, vector<128x64xf32>, vector<104x64xf32> -> vector<104x64xf32>
    %c0_3 = arith.constant 0 : index
    %c0_4 = arith.constant 0 : index
    %3 = vector.load %arg3[%c0_3, %c0_4] : memref<1x64xf32, #tpu.memory_space<vmem>>, vector<1x64xf32>
    %4 = vector.broadcast %3 : vector<1x64xf32> to vector<104x64xf32>
    %5 = arith.addf %2, %4 : vector<104x64xf32>
    %cst_5 = arith.constant 0.000000e+00 : f32
    %6 = vector.broadcast %cst_5 : f32 to vector<104x64xf32>
    %7 = arith.maximumf %5, %6 : vector<104x64xf32>
    %c0_6 = arith.constant 0 : index
    %c0_7 = arith.constant 0 : index
    %8 = vector.load %arg4[%c0_6, %c0_7] : memref<64x32xf32, #tpu.memory_space<vmem>>, vector<64x32xf32>
    %cst_8 = arith.constant dense<0.000000e+00> : vector<104x32xf32>
    %9 = tpu.matmul %7, %8, %cst_8 {dimension_numbers = #tpu.dot_dimension_numbers<[1], [0], [0], [1], [0, 0, 1, 1], [], []>} : vector<104x64xf32>, vector<64x32xf32>, vector<104x32xf32> -> vector<104x32xf32>
    %c0_9 = arith.constant 0 : index
    %c0_10 = arith.constant 0 : index
    %10 = vector.load %arg5[%c0_9, %c0_10] : memref<1x32xf32, #tpu.memory_space<vmem>>, vector<1x32xf32>
    %11 = vector.broadcast %10 : vector<1x32xf32> to vector<104x32xf32>
    %12 = arith.addf %9, %11 : vector<104x32xf32>
    %cst_11 = arith.constant 0.000000e+00 : f32
    %13 = vector.broadcast %cst_11 : f32 to vector<104x32xf32>
    %14 = arith.maximumf %12, %13 : vector<104x32xf32>
    %c0_12 = arith.constant 0 : index
    %c0_13 = arith.constant 0 : index
    %15 = vector.load %arg6[%c0_12, %c0_13] : memref<32x128xf32, #tpu.memory_space<vmem>>, vector<32x128xf32>
    %cst_14 = arith.constant dense<0.000000e+00> : vector<104x128xf32>
    %16 = tpu.matmul %14, %15, %cst_14 {dimension_numbers = #tpu.dot_dimension_numbers<[1], [0], [0], [1], [0, 0, 1, 1], [], []>} : vector<104x32xf32>, vector<32x128xf32>, vector<104x128xf32> -> vector<104x128xf32>
    %c0_15 = arith.constant 0 : index
    %c0_16 = arith.constant 0 : index
    %17 = vector.load %arg7[%c0_15, %c0_16] : memref<1x128xf32, #tpu.memory_space<vmem>>, vector<1x128xf32>
    %18 = vector.broadcast %17 : vector<1x128xf32> to vector<104x128xf32>
    %19 = arith.addf %16, %18 : vector<104x128xf32>
    %c0_17 = arith.constant 0 : index
    %c0_18 = arith.constant 0 : index
    %20 = vector.load %arg8[%c0_17, %c0_18] : memref<104x128xf32, #tpu.memory_space<vmem>>, vector<104x128xf32>
    tpu.vector_store %arg8[%c0_17, %c0_18], %19 {strides = array<i32>} : memref<104x128xf32, #tpu.memory_space<vmem>>, vector<104x128xf32>,
    return
  }
  func.func @transform_0(%arg0: i32) -> (i32, i32) {
    %c0_i32 = arith.constant 0 : i32
    %c0_i32_0 = arith.constant 0 : i32
    return %arg0, %c0_i32 : i32, i32
  }
  func.func @transform_1(%arg0: i32) -> (i32, i32) {
    %c0_i32 = arith.constant 0 : i32
    %c0_i32_0 = arith.constant 0 : i32
    %c0_i32_1 = arith.constant 0 : i32
    return %c0_i32, %c0_i32_0 : i32, i32
  }
  func.func @transform_2(%arg0: i32) -> (i32, i32) {
    %c0_i32 = arith.constant 0 : i32
    %c0_i32_0 = arith.constant 0 : i32
    %c0_i32_1 = arith.constant 0 : i32
    return %c0_i32, %c0_i32_0 : i32, i32
  }
  func.func @transform_3(%arg0: i32) -> (i32, i32) {
    %c0_i32 = arith.constant 0 : i32
    %c0_i32_0 = arith.constant 0 : i32
    %c0_i32_1 = arith.constant 0 : i32
    return %c0_i32, %c0_i32_0 : i32, i32
  }
  func.func @transform_4(%arg0: i32) -> (i32, i32) {
    %c0_i32 = arith.constant 0 : i32
    %c0_i32_0 = arith.constant 0 : i32
    %c0_i32_1 = arith.constant 0 : i32
    return %c0_i32, %c0_i32_0 : i32, i32
  }
  func.func @transform_5(%arg0: i32) -> (i32, i32) {
    %c0_i32 = arith.constant 0 : i32
    %c0_i32_0 = arith.constant 0 : i32
    %c0_i32_1 = arith.constant 0 : i32
    return %c0_i32, %c0_i32_0 : i32, i32
  }
  func.func @transform_6(%arg0: i32) -> (i32, i32) {
    %c0_i32 = arith.constant 0 : i32
    %c0_i32_0 = arith.constant 0 : i32
    %c0_i32_1 = arith.constant 0 : i32
    return %c0_i32, %c0_i32_0 : i32, i32
  }
  func.func @transform_7(%arg0: i32) -> (i32, i32) {
    %c0_i32 = arith.constant 0 : i32
    %c0_i32_0 = arith.constant 0 : i32
    return %arg0, %c0_i32 : i32, i32
  }
}

</mosaic_0001>

<bundles_post_ra>
// kernel: mlp_classifier_forward.1
= control target key start
LH: loop header
LB: loop body
LE: loop exit
PB: predicated region body
PF: predicated region fallthrough
CT: control target
= control target key end

     0   :  { %12 = vsyncpa [#allocation3], 0  ;;  %s1735_s24 = smov 0   ;;  %s1737_s25 = smov 0   ;;  %s2174_s0 = inlined_call_operand.vmem [shape: f32[200,128], index: 0, kind: input, shape index: {}]   ;;  %s2175_s1 = inlined_call_operand.vmem [shape: f32[128,64], index: 1, kind: input, shape index: {}]   ;;  %s2176_s2 = inlined_call_operand.vmem [shape: f32[1,64], index: 2, kind: input, shape index: {}]   ;;  %s2177_s3 = inlined_call_operand.vmem [shape: f32[64,32], index: 3, kind: input, shape index: {}]   ;;  %s2178_s4 = inlined_call_operand.vmem [shape: f32[1,32], index: 4, kind: input, shape index: {}]   ;;  %s2179_s5 = inlined_call_operand.vmem [shape: f32[32,128], index: 5, kind: input, shape index: {}]   ;;  %s2180_s6 = inlined_call_operand.hbm [shape: f32[1,128], index: 6, kind: input, shape index: {}]   ;;  %s2181_s7 = inlined_call_operand.vmem [shape: f32[200,128], index: 7, kind: output, shape index: {}]  }
   0x1   :  { %s1739_s26 = smov 0  }
   0x2 LB: > { %s1748_s27 = sadd.s32 4294967295, %s1658_s26   ;;  %s1750_s28 = sadd.s32 1, %s1658_s26   ;;  %s1658_s26 = sphi %s1739_s26, %s2189_s26   ;;  %s1654_s25 = sphi %s1737_s25, %s2188_s25   ;;  %s1650_s24 = sphi %s1735_s24, %s2187_s24  }
   0x3   : > { %s174_s29 = ssub.s32 %s1658_s26, %s1750_s28  ;;  %s177_s30 = sadd.s32 1, %s1654_s25 }
   0x4   : > { %p175_p0 = scmp.eq.s32.totalorder %s174_s29, 0  ;;  %p187_p1 = scmp.ne.s32.totalorder %s1654_s25, %s1650_s24 }
   0x5   : > { %p188_p2 = scmp.eq.s32.totalorder %s1748_s27, 1  ;;  %p1163_p3 = scmp.ge.s32.totalorder %s1658_s26, 1 }
   0x6   : > { %s1758_s8 = scalar_select %p175_p0, %s1654_s25, %s177_s30  }
   0x7   : > { %p1760_p4 = por %p188_p2, %p187_p1  ;;  %p201_p5 = scmp.lt.s32.totalorder %s1658_s26, 3 }
   0x8   : > { %p1476_p6 = scmp.eq.s32.totalorder %s1748_s27, 0  ;;  %s1692_s11 = smov [#allocation2]  }
   0x9   : > { %p1765_p7 = pnand %p1163_p3, %p201_p5  ;;  %s229_s12 = sshll.u32 %s1692_s11, 4  ;;  %s230_s12 = int_to_ptr.vmem [resolvable:$true] %s229_s12 }
   0xa   : > { %s1585_s13 = scalar_lea.vmem %s230_s12, 16  ;;  %s1592_s14 = scalar_lea.vmem %s230_s12, 32 }
   0xb   : > { %p1472_p8 = pneg %p1765_p7  ;;  %p1586_p11 = scmp.ne.s32.totalorder %s230_s12, %s1585_s13 }
   0xc   : > { %p1593_p0 = scmp.lt.s32.totalorder %s230_s12, %s230_s12  ;;  %p1594_p1 = scmp.lt.s32.totalorder %s1592_s14, %s1585_s13 }
   0xd   : > { %p1473_p9 = pnand %p1476_p6, %p1472_p8 }
   0xe   : > { %p1595_p2 = por %p1594_p1, %p1593_p0 }
   0xf   : > { %p1576_p10 = pneg %p1473_p9 }
  0x11   : > { %p1588_p12 = pnand %p1586_p11, %p1576_p10 }
  0x13   : > { %p1589_p13 = pneg %p1588_p12 }
  0x15   : > { %p1596_p3 = pnand %p1595_p2, %p1589_p13 }
  0x17   : > { %1599 = shalt.err (!%p1596_p3)
}
  0x18   : > { %1475 = dma.hbm_to_vmem [thread:$0]  (!%p1473_p9), %s2180_s6, 16, %s230_s12, [#allocation3]  }
  0x19   : > { %259 = sbr.rel (%p1765_p7) target bundleno = 756 (0x2f4), region = 48 }
  0x1e   : > { %1645 = dma.done.wait (%p1476_p6), [#allocation3], 16  }
  0x1f   : > { %1647 = vsyncadd (%p1476_p6), [#allocation3], 4294967280  ;;  %v1693_v0 = vmov 0.0   ;;  %vm1694_vm0 = vmmov 0   ;;  %v341_v1 = vld [vmem:[%s2175_s1 + $0x78] sm:$0xff]  ;;  %v340_v2 = vld [vmem:[%s2175_s1 + $0x70] sm:$0xff] }
  0x20   : > { %1278 = vmatprep.subr.mxu0 %v1693_v0  ;;  %1310 = vmatprep.mubr.msk.f32.mxu0 %vm1694_vm0, %v1693_v0  ;;  %v339_v3 = vld [vmem:[%s2175_s1 + $0x68] sm:$0xff]  ;;  %v338_v4 = vld [vmem:[%s2175_s1 + $0x60] sm:$0xff]  ;;  %v337_v5 = vld [vmem:[%s2175_s1 + $0x58] sm:$0xff]  ;;  %s1821_s16 = smul.u32 13, %s1748_s27  ;;  %vm507_vm1 = vcmask 523264   ;;  %vm701_vm2 = vcmask 261120  }
  0x21   : > { %1451 = vmatprep.subr.mxu1 %v1693_v0  ;;  %1377 = vmatprep.mubr.msk.f32.mxu1 %vm1694_vm0, %v1693_v0  ;;  %v336_v6 = vld [vmem:[%s2175_s1 + $0x50] sm:$0xff]  ;;  %v1813_v7 = vld [vmem:[%s2177_s3 + $0x38] sm:$0xff]  ;;  %v335_v8 = vld [vmem:[%s2175_s1 + $0x48] sm:$0xff]  ;;  %s291_s18 = sand.u32 1, %s1650_s24   ;;  %s1210_s21 = smul.u32 (%p1760_p4), 104, %s1748_s27 }
  0x22   : > { %1279 = vmatpush3.msra.mxu0 %v341_v1  ;;  %1459 = vmatpush3.msra.mxu1 %v1813_v7  ;;  %v498_v9 = vld [vmem:[%s2177_s3 + $0x30] sm:$0xff]  ;;  %v334_v10 = vld [vmem:[%s2175_s1 + $0x40] sm:$0xff]  ;;  %v497_v11 = vld [vmem:[%s2177_s3 + $0x28] sm:$0xff]  ;;  %p299_p5 = scmp.lt.s32.totalorder %s1821_s16, 24  ;;  %s892_s24 = ssub.s32 (%p1760_p4), 25, %s1821_s16 }
  0x23   : > { %1280 = vmatprep.subr.mxu0 %v1693_v0  ;;  %1452 = vmatprep.subr.mxu1 %v1693_v0  ;;  %v333_v12 = vld [vmem:[%s2175_s1 + $0x38] sm:$0xff]  ;;  %v496_v13 = vld [vmem:[%s2177_s3 + $0x20] sm:$0xff]  ;;  %v332_v14 = vld [vmem:[%s2175_s1 + $0x30] sm:$0xff]  ;;  %p893_p6 = scmp.lt.s32.totalorder (%p1760_p4), %s892_s24, 13  ;;  %s2092_s26 = scalar_lea.vmem (%p1760_p4), %s2181_s7, %s1210_s21  }
  0x24   : > { %1281 = vmatpush3.msra.mxu0 %v340_v2  ;;  %1460 = vmatpush3.msra.mxu1 %v498_v9  ;;  %v495_v15 = vld [vmem:[%s2177_s3 + $0x18] sm:$0xff]  ;;  %v331_v16 = vld [vmem:[%s2175_s1 + $0x28] sm:$0xff]  ;;  %s300_s17 = scalar_select %p299_p5, %s1821_s16, 24  ;;  %v494_v17 = vld [vmem:[%s2177_s3 + $0x10] sm:$0xff] }
  0x25   : > { %1282 = vmatprep.subr.mxu0 %v1693_v0  ;;  %1453 = vmatprep.subr.mxu1 %v1693_v0  ;;  %v330_v18 = vld [vmem:[%s2175_s1 + $0x20] sm:$0xff]  ;;  %v493_v19 = vld [vmem:[%s2177_s3 + $0x8] sm:$0xff]  ;;  %v329_v20 = vld [vmem:[%s2175_s1 + $0x18] sm:$0xff] }
  0x26   : > { %1283 = vmatpush3.msra.mxu0 %v339_v3  ;;  %1461 = vmatpush3.msra.mxu1 %v497_v11  ;;  %s1168_s30 = sshll.u32 %s300_s17, 3  ;;  %v492_v21 = vld [vmem:[%s2177_s3] sm:$0xff]  ;;  %v328_v22 = vld [vmem:[%s2175_s1 + $0x10] sm:$0xff]  ;;  %v327_v23 = vld [vmem:[%s2175_s1 + $0x8] sm:$0xff] }
  0x27   : > { %1284 = vmatprep.subr.mxu0 %v1693_v0  ;;  %1454 = vmatprep.subr.mxu1 %v1693_v0  ;;  %s1889_s19 = scalar_lea.vmem %s2174_s0, %s1168_s30  ;;  %v326_v24 = vld [vmem:[%s2175_s1] sm:$0xff]  ;;  %v693_v59 = vld [vmem:[%s2179_s5 + $0x18] sm:$0xff]  ;;  %v692_v62 = vld [vmem:[%s2179_s5 + $0x10] sm:$0xff] }
  0x28   : > { %1285 = vmatpush3.msra.mxu0 %v338_v4  ;;  %1462 = vmatpush3.msra.mxu1 %v496_v13  ;;  %v313_v25 = vld [vmem:[%s1889_s19] sm:$0xff]  ;;  %v314_v26 = vld [vmem:[%s1889_s19 + $0x8] sm:$0xff]  ;;  %v315_v27 = vld [vmem:[%s1889_s19 + $0x10] sm:$0xff] }
  0x29   : > { %1286 = vmatprep.subr.mxu0 %v1693_v0  ;;  %1455 = vmatprep.subr.mxu1 %v1693_v0  ;;  %v316_v28 = vld [vmem:[%s1889_s19 + $0x18] sm:$0xff]  ;;  %v317_v29 = vld [vmem:[%s1889_s19 + $0x20] sm:$0xff]  ;;  %v318_v30 = vld [vmem:[%s1889_s19 + $0x28] sm:$0xff] }
  0x2a   : > { %1287 = vmatpush3.msra.mxu0 %v337_v5  ;;  %1463 = vmatpush3.msra.mxu1 %v495_v15  ;;  %v319_v31 = vld [vmem:[%s1889_s19 + $0x30] sm:$0xff]  ;;  %v320_v32 = vld [vmem:[%s1889_s19 + $0x38] sm:$0xff]  ;;  %v321_v33 = vld [vmem:[%s1889_s19 + $0x40] sm:$0xff] }
  0x2b   : > { %1288 = vmatprep.subr.mxu0 %v1693_v0  ;;  %1456 = vmatprep.subr.mxu1 %v1693_v0  ;;  %v322_v34 = vld [vmem:[%s1889_s19 + $0x48] sm:$0xff]  ;;  %v323_v35 = vld [vmem:[%s1889_s19 + $0x50] sm:$0xff]  ;;  %v324_v36 = vld [vmem:[%s1889_s19 + $0x58] sm:$0xff] }
  0x2c   : > { %1289 = vmatpush3.msra.mxu0 %v336_v6  ;;  %1464 = vmatpush3.msra.mxu1 %v494_v17  ;;  %v325_v37 = vld [vmem:[%s1889_s19 + $0x60] sm:$0xff]  ;;  %v691_v2 = vld [vmem:[%s2179_s5 + $0x8] sm:$0xff]  ;;  %s1467_s19 = smul.u32 104, %s291_s18 }
  0x2d   : > { %1290 = vmatprep.subr.mxu0 %v1693_v0  ;;  %1457 = vmatprep.subr.mxu1 %v1693_v0  ;;  %v1947_v38 = vld [vmem:[%s2176_s2] ss:$0 sm:$0xff] }
  0x2e   : > { %1291 = vmatpush3.msra.mxu0 %v335_v8  ;;  %1465 = vmatpush3.msra.mxu1 %v493_v19  ;;  %v690_v5 = vld [vmem:[%s2179_s5] sm:$0xff]  ;;  %s2070_s20 = scalar_lea.vmem [#allocation4], %s1467_s19  }
  0x2f   : > { %1292 = vmatprep.subr.mxu0 %v1693_v0  ;;  %1458 = vmatprep.subr.mxu1 %v1693_v0 }
  0x30   : > { %1293 = vmatpush3.msra.mxu0 %v334_v10  ;;  %1466 = vmatpush3.msra.mxu1 %v492_v21 }
  0x31   : > { %1294 = vmatprep.subr.mxu0 %v1693_v0  ;;  %1404 = vmatprep.subr.mxu1 %v1693_v0 }
  0x32   : > { %1295 = vmatpush3.msra.mxu0 %v333_v12 }
  0x33   : > { %1296 = vmatprep.subr.mxu0 %v1693_v0 }
  0x34   : > { %1297 = vmatpush3.msra.mxu0 %v332_v14 }
  0x35   : > { %1298 = vmatprep.subr.mxu0 %v1693_v0 }
  0x36   : > { %1299 = vmatpush3.msra.mxu0 %v331_v16 }
  0x37   : > { %1300 = vmatprep.subr.mxu0 %v1693_v0 }
  0x38   : > { %1301 = vmatpush3.msra.mxu0 %v330_v18 }
  0x39   : > { %1302 = vmatprep.subr.mxu0 %v1693_v0 }
  0x3a   : > { %1303 = vmatpush3.msra.mxu0 %v329_v20 }
  0x3b   : > { %1304 = vmatprep.subr.mxu0 %v1693_v0 }
  0x3c   : > { %1305 = vmatpush3.msra.mxu0 %v328_v22 }
  0x3d   : > { %1306 = vmatprep.subr.mxu0 %v1693_v0 }
  0x3e   : > { %1307 = vmatpush3.msra.mxu0 %v327_v23 }
  0x3f   : > { %1308 = vmatprep.subr.mxu0 %v1693_v0 }
  0x40   : > { %1309 = vmatpush3.msra.mxu0 %v326_v24 }
  0x41   : > { %1311 = vmatmul.mubr.f32.vlgmr.msra.gmra.mxu0 %v313_v25  ;;  %1349 = vmatprep.subr.mxu0 %v1693_v0 }
  0x42   : > { %1313 = vmatprep.mubr.msk.f32.mxu0 %vm1694_vm0, %v1693_v0  ;;  %1350 = vmatpush3.msra.mxu0 %v1813_v7 }
  0x43   : > { %1351 = vmatprep.subr.mxu0 %v1693_v0 }
  0x44   : > { %1352 = vmatpush3.msra.mxu0 %v498_v9 }
  0x45   : > { %1314 = vmatmul.mubr.f32.gmra.mxu0 %v314_v26  ;;  %1353 = vmatprep.subr.mxu0 %v1693_v0 }
  0x46   : > { %1316 = vmatprep.mubr.msk.f32.mxu0 %vm1694_vm0, %v1693_v0  ;;  %1354 = vmatpush3.msra.mxu0 %v497_v11 }
  0x47   : > { %1355 = vmatprep.subr.mxu0 %v1693_v0 }
  0x48   : > { %1356 = vmatpush3.msra.mxu0 %v496_v13 }
  0x49   : > { %1317 = vmatmul.mubr.f32.gmra.mxu0 %v315_v27  ;;  %1357 = vmatprep.subr.mxu0 %v1693_v0 }
  0x4a   : > { %1319 = vmatprep.mubr.msk.f32.mxu0 %vm1694_vm0, %v1693_v0  ;;  %1358 = vmatpush3.msra.mxu0 %v495_v15 }
  0x4b   : > { %1359 = vmatprep.subr.mxu0 %v1693_v0 }
  0x4c   : > { %1360 = vmatpush3.msra.mxu0 %v494_v17 }
  0x4d   : > { %1320 = vmatmul.mubr.f32.gmra.mxu0 %v316_v28  ;;  %1361 = vmatprep.subr.mxu0 %v1693_v0 }
  0x4e   : > { %1322 = vmatprep.mubr.msk.f32.mxu0 %vm1694_vm0, %v1693_v0  ;;  %1362 = vmatpush3.msra.mxu0 %v493_v19 }
  0x4f   : > { %1363 = vmatprep.subr.mxu0 %v1693_v0 }
  0x50   : > { %1364 = vmatpush3.msra.mxu0 %v492_v21 }
  0x51   : > { %1323 = vmatmul.mubr.f32.gmra.mxu0 %v317_v29 }
  0x52   : > { %1325 = vmatprep.mubr.msk.f32.mxu0 %vm1694_vm0, %v1693_v0 }
  0x55   : > { %1326 = vmatmul.mubr.f32.gmra.mxu0 %v318_v30 }
  0x56   : > { %1328 = vmatprep.mubr.msk.f32.mxu0 %vm1694_vm0, %v1693_v0 }
  0x59   : > { %1329 = vmatmul.mubr.f32.gmra.mxu0 %v319_v31 }
  0x5a   : > { %1331 = vmatprep.mubr.msk.f32.mxu0 %vm1694_vm0, %v1693_v0 }
  0x5d   : > { %1332 = vmatmul.mubr.f32.gmra.mxu0 %v320_v32  ;;  %v2017_v32 = vld [vmem:[%s2178_s4] ss:$0 sm:$0xff] }
  0x5e   : > { %1334 = vmatprep.mubr.msk.f32.mxu0 %vm1694_vm0, %v1693_v0 }
  0x61   : > { %1335 = vmatmul.mubr.f32.gmra.mxu0 %v321_v33 }
  0x62   : > { %1337 = vmatprep.mubr.msk.f32.mxu0 %vm1694_vm0, %v1693_v0 }
  0x65   : > { %1338 = vmatmul.mubr.f32.gmra.mxu0 %v322_v34 }
  0x66   : > { %1340 = vmatprep.mubr.msk.f32.mxu0 %vm1694_vm0, %v1693_v0 }
  0x69   : > { %1341 = vmatmul.mubr.f32.gmra.mxu0 %v323_v35 }
  0x6a   : > { %1343 = vmatprep.mubr.msk.f32.mxu0 %vm1694_vm0, %v1693_v0 }
  0x6d   : > { %1344 = vmatmul.mubr.f32.gmra.mxu0 %v324_v36 }
  0x6e   : > { %1346 = vmatprep.mubr.msk.f32.mxu0 %vm1694_vm0, %v1693_v0 }
  0x71   : > { %1347 = vmatmul.mubr.f32.gmra.mxu0 %v325_v37 }
  0x72   : > { %1365 = vmatprep.mubr.msk.f32.mxu0 %vm1694_vm0, %v1693_v0 }
 0x101   : > { %v415_v39 = vpop.f32.mrf.mxu0 }
 0x102   : > { %v416_v40 = vadd.f32 %v1947_v38, %v415_v39 }
 0x103   : > { %v1312_v41 = vpop.f32.mrf.mxu0 }
 0x104   : > { %v479_v42 = vmax.f32 %v416_v40, 0.0 }
 0x105   : > { %v420_v43 = vpop.f32.mrf.mxu0 }
 0x106   : > { %v421_v44 = vadd.f32 %v1947_v38, %v420_v43  ;;  %1366 = vmatmul.mubr.msk.f32.vlgmr.msra.gmra.mxu0 %vm507_vm1, %v479_v42 }
 0x107   : > { %v1315_v45 = vpop.f32.mrf.mxu0  ;;  %1368 = vmatprep.mubr.msk.f32.mxu0 %vm1694_vm0, %v1693_v0 }
 0x108   : > { %v480_v46 = vmax.f32 %v421_v44, 0.0 }
 0x109   : > { %v425_v47 = vpop.f32.mrf.mxu0 }
 0x10a   : > { %v426_v48 = vadd.f32 %v1947_v38, %v425_v47  ;;  %1369 = vmatmul.mubr.msk.f32.gmra.mxu0 %vm507_vm1, %v480_v46 }
 0x10b   : > { %v1318_v49 = vpop.f32.mrf.mxu0  ;;  %1371 = vmatprep.mubr.msk.f32.mxu0 %vm1694_vm0, %v1693_v0 }
 0x10c   : > { %v481_v50 = vmax.f32 %v426_v48, 0.0 }
 0x10d   : > { %v430_v51 = vpop.f32.mrf.mxu0 }
 0x10e   : > { %v431_v52 = vadd.f32 %v1947_v38, %v430_v51  ;;  %1372 = vmatmul.mubr.msk.f32.gmra.mxu0 %vm507_vm1, %v481_v50 }
 0x10f   : > { %v1321_v53 = vpop.f32.mrf.mxu0  ;;  %1374 = vmatprep.mubr.msk.f32.mxu0 %vm1694_vm0, %v1693_v0 }
 0x110   : > { %v482_v54 = vmax.f32 %v431_v52, 0.0 }
 0x111   : > { %v435_v55 = vpop.f32.mrf.mxu0 }
 0x112   : > { %v436_v56 = vadd.f32 %v1947_v38, %v435_v55  ;;  %1375 = vmatmul.mubr.msk.f32.gmra.mxu0 %vm507_vm1, %v482_v54 }
 0x113   : > { %v1324_v57 = vpop.f32.mrf.mxu0 }
 0x114   : > { %v483_v58 = vmax.f32 %v436_v56, 0.0 }
 0x115   : > { %v440_v60 = vpop.f32.mrf.mxu0 }
 0x116   : > { %v441_v61 = vadd.f32 %v1947_v38, %v440_v60  ;;  %1378 = vmatmul.mubr.msk.f32.vlgmr.msra.gmra.mxu1 %vm507_vm1, %v483_v58 }
 0x117   : > { %v1327_v63 = vpop.f32.mrf.mxu0  ;;  %1380 = vmatprep.mubr.msk.f32.mxu1 %vm1694_vm0, %v1693_v0  ;;  %1405 = vmatpush3.msra.mxu1 %v693_v59 }
 0x118   : > { %v484_v1 = vmax.f32 %v441_v61, 0.0  ;;  %1406 = vmatprep.subr.mxu1 %v1693_v0 }
 0x119   : > { %v445_v3 = vpop.f32.mrf.mxu0  ;;  %1407 = vmatpush3.msra.mxu1 %v692_v62 }
 0x11a   : > { %v446_v4 = vadd.f32 %v1947_v38, %v445_v3  ;;  %1381 = vmatmul.mubr.msk.f32.gmra.mxu1 %vm507_vm1, %v484_v1  ;;  %1408 = vmatprep.subr.mxu1 %v1693_v0 }
 0x11b   : > { %v1330_v6 = vpop.f32.mrf.mxu0  ;;  %1383 = vmatprep.mubr.msk.f32.mxu1 %vm1694_vm0, %v1693_v0  ;;  %1409 = vmatpush3.msra.mxu1 %v691_v2 }
 0x11c   : > { %v485_v7 = vmax.f32 %v446_v4, 0.0  ;;  %1410 = vmatprep.subr.mxu1 %v1693_v0 }
 0x11d   : > { %v450_v8 = vpop.f32.mrf.mxu0  ;;  %1411 = vmatpush3.msra.mxu1 %v690_v5 }
 0x11e   : > { %v451_v9 = vadd.f32 %v1947_v38, %v450_v8  ;;  %1384 = vmatmul.mubr.msk.f32.gmra.mxu1 %vm507_vm1, %v485_v7 }
 0x11f   : > { %v1333_v10 = vpop.f32.mrf.mxu0  ;;  %1386 = vmatprep.mubr.msk.f32.mxu1 %vm1694_vm0, %v1693_v0 }
 0x120   : > { %v486_v11 = vmax.f32 %v451_v9, 0.0 }
 0x121   : > { %v455_v12 = vpop.f32.mrf.mxu0 }
 0x122   : > { %v456_v13 = vadd.f32 %v1947_v38, %v455_v12  ;;  %1387 = vmatmul.mubr.msk.f32.gmra.mxu1 %vm507_vm1, %v486_v11 }
 0x123   : > { %v1336_v14 = vpop.f32.mrf.mxu0  ;;  %1389 = vmatprep.mubr.msk.f32.mxu1 %vm1694_vm0, %v1693_v0 }
 0x124   : > { %v487_v15 = vmax.f32 %v456_v13, 0.0 }
 0x125   : > { %v460_v16 = vpop.f32.mrf.mxu0 }
 0x126   : > { %v461_v17 = vadd.f32 %v1947_v38, %v460_v16  ;;  %1390 = vmatmul.mubr.msk.f32.gmra.mxu1 %vm507_vm1, %v487_v15 }
 0x127   : > { %v1339_v18 = vpop.f32.mrf.mxu0  ;;  %1392 = vmatprep.mubr.msk.f32.mxu1 %vm1694_vm0, %v1693_v0 }
 0x128   : > { %v488_v19 = vmax.f32 %v461_v17, 0.0 }
 0x129   : > { %v465_v20 = vpop.f32.mrf.mxu0 }
 0x12a   : > { %v466_v21 = vadd.f32 %v1947_v38, %v465_v20  ;;  %1393 = vmatmul.mubr.msk.f32.gmra.mxu1 %vm507_vm1, %v488_v19 }
 0x12b   : > { %v1342_v22 = vpop.f32.mrf.mxu0  ;;  %1395 = vmatprep.mubr.msk.f32.mxu1 %vm1694_vm0, %v1693_v0 }
 0x12c   : > { %v489_v23 = vmax.f32 %v466_v21, 0.0  ;;  %v1184_v22 = vld [vmem:[#allocation2] ss:$0 sm:$0xff] }
 0x12d   : > { %v470_v24 = vpop.f32.mrf.mxu0 }
 0x12e   : > { %v471_v25 = vadd.f32 %v1947_v38, %v470_v24  ;;  %1396 = vmatmul.mubr.msk.f32.gmra.mxu1 %vm507_vm1, %v489_v23 }
 0x12f   : > { %v1345_v26 = vpop.f32.mrf.mxu0  ;;  %1398 = vmatprep.mubr.msk.f32.mxu1 %vm1694_vm0, %v1693_v0 }
 0x130   : > { %v490_v27 = vmax.f32 %v471_v25, 0.0 }
 0x131   : > { %v475_v28 = vpop.f32.mrf.mxu0 }
 0x132   : > { %v476_v29 = vadd.f32 %v1947_v38, %v475_v28  ;;  %1399 = vmatmul.mubr.msk.f32.gmra.mxu1 %vm507_vm1, %v490_v27 }
 0x133   : > { %v1348_v30 = vpop.f32.mrf.mxu0  ;;  %1401 = vmatprep.mubr.msk.f32.mxu1 %vm1694_vm0, %v1693_v0 }
 0x134   : > { %v491_v31 = vmax.f32 %v476_v29, 0.0 }
 0x136   : > { %1402 = vmatmul.mubr.msk.f32.gmra.mxu1 %vm507_vm1, %v491_v31 }
 0x137   : > { %1412 = vmatprep.mubr.msk.f32.mxu1 %vm1694_vm0, %v1693_v0 }
 0x1c6   : > { %v613_v33 = vpop.f32.mrf.mxu0 }
 0x1c7   : > { %v614_v34 = vadd.f32 %v2017_v32, %v613_v33 }
 0x1c8   : > { %v1367_v35 = vpop.f32.mrf.mxu0 }
 0x1c9   : > { %v677_v36 = vmax.f32 %v614_v34, 0.0 }
 0x1ca   : > { %v618_v37 = vpop.f32.mrf.mxu0 }
 0x1cb   : > { %v619_v38 = vadd.f32 %v2017_v32, %v618_v37  ;;  %1413 = vmatmul.mubr.msk.f32.vlgmr.msra.gmra.mxu1 %vm701_vm2, %v677_v36 }
 0x1cc   : > { %v1370_v39 = vpop.f32.mrf.mxu0  ;;  %1415 = vmatprep.mubr.msk.f32.mxu1 %vm1694_vm0, %v1693_v0 }
 0x1cd   : > { %v678_v40 = vmax.f32 %v619_v38, 0.0 }
 0x1ce   : > { %v623_v41 = vpop.f32.mrf.mxu0 }
 0x1cf   : > { %v624_v42 = vadd.f32 %v2017_v32, %v623_v41  ;;  %1416 = vmatmul.mubr.msk.f32.gmra.mxu1 %vm701_vm2, %v678_v40 }
 0x1d0   : > { %v1373_v43 = vpop.f32.mrf.mxu0  ;;  %1418 = vmatprep.mubr.msk.f32.mxu1 %vm1694_vm0, %v1693_v0 }
 0x1d1   : > { %v679_v44 = vmax.f32 %v624_v42, 0.0 }
 0x1d2   : > { %v628_v45 = vpop.f32.mrf.mxu0 }
 0x1d3   : > { %v629_v46 = vadd.f32 %v2017_v32, %v628_v45  ;;  %1419 = vmatmul.mubr.msk.f32.gmra.mxu1 %vm701_vm2, %v679_v44 }
 0x1d4   : > { %v1376_v47 = vpop.f32.mrf.mxu0  ;;  %1421 = vmatprep.mubr.msk.f32.mxu1 %vm1694_vm0, %v1693_v0 }
 0x1d5   : > { %v680_v48 = vmax.f32 %v629_v46, 0.0 }
 0x1d6   : > { %v633_v49 = vpop.f32.mrf.mxu1 }
 0x1d7   : > { %v634_v50 = vadd.f32 %v2017_v32, %v633_v49  ;;  %1422 = vmatmul.mubr.msk.f32.gmra.mxu1 %vm701_vm2, %v680_v48 }
 0x1d8   : > { %v1379_v51 = vpop.f32.mrf.mxu1  ;;  %1424 = vmatprep.mubr.msk.f32.mxu1 %vm1694_vm0, %v1693_v0 }
 0x1d9   : > { %v681_v52 = vmax.f32 %v634_v50, 0.0 }
 0x1da   : > { %v638_v53 = vpop.f32.mrf.mxu1 }
 0x1db   : > { %v639_v54 = vadd.f32 %v2017_v32, %v638_v53  ;;  %1425 = vmatmul.mubr.msk.f32.gmra.mxu1 %vm701_vm2, %v681_v52 }
 0x1dc   : > { %v1382_v55 = vpop.f32.mrf.mxu1  ;;  %1427 = vmatprep.mubr.msk.f32.mxu1 %vm1694_vm0, %v1693_v0 }
 0x1dd   : > { %v682_v56 = vmax.f32 %v639_v54, 0.0 }
 0x1de   : > { %v643_v57 = vpop.f32.mrf.mxu1 }
 0x1df   : > { %v644_v58 = vadd.f32 %v2017_v32, %v643_v57  ;;  %1428 = vmatmul.mubr.msk.f32.gmra.mxu1 %vm701_vm2, %v682_v56 }
 0x1e0   : > { %v1385_v59 = vpop.f32.mrf.mxu1  ;;  %1430 = vmatprep.mubr.msk.f32.mxu1 %vm1694_vm0, %v1693_v0 }
 0x1e1   : > { %v683_v60 = vmax.f32 %v644_v58, 0.0 }
 0x1e2   : > { %v648_v61 = vpop.f32.mrf.mxu1 }
 0x1e3   : > { %v649_v62 = vadd.f32 %v2017_v32, %v648_v61  ;;  %1431 = vmatmul.mubr.msk.f32.gmra.mxu1 %vm701_vm2, %v683_v60 }
 0x1e4   : > { %v1388_v63 = vpop.f32.mrf.mxu1  ;;  %1433 = vmatprep.mubr.msk.f32.mxu1 %vm1694_vm0, %v1693_v0 }
 0x1e5   : > { %v684_v1 = vmax.f32 %v649_v62, 0.0 }
 0x1e6   : > { %v653_v2 = vpop.f32.mrf.mxu1 }
 0x1e7   : > { %v654_v3 = vadd.f32 %v2017_v32, %v653_v2  ;;  %1434 = vmatmul.mubr.msk.f32.gmra.mxu1 %vm701_vm2, %v684_v1 }
 0x1e8   : > { %v1391_v4 = vpop.f32.mrf.mxu1  ;;  %1436 = vmatprep.mubr.msk.f32.mxu1 %vm1694_vm0, %v1693_v0 }
 0x1e9   : > { %v685_v5 = vmax.f32 %v654_v3, 0.0 }
 0x1ea   : > { %v658_v6 = vpop.f32.mrf.mxu1 }
 0x1eb   : > { %v659_v7 = vadd.f32 %v2017_v32, %v658_v6  ;;  %1437 = vmatmul.mubr.msk.f32.gmra.mxu1 %vm701_vm2, %v685_v5 }
 0x1ec   : > { %v1394_v8 = vpop.f32.mrf.mxu1  ;;  %1439 = vmatprep.mubr.msk.f32.mxu1 %vm1694_vm0, %v1693_v0 }
 0x1ed   : > { %v686_v9 = vmax.f32 %v659_v7, 0.0 }
 0x1ee   : > { %v663_v10 = vpop.f32.mrf.mxu1 }
 0x1ef   : > { %v664_v11 = vadd.f32 %v2017_v32, %v663_v10  ;;  %1440 = vmatmul.mubr.msk.f32.gmra.mxu1 %vm701_vm2, %v686_v9 }
 0x1f0   : > { %v1397_v12 = vpop.f32.mrf.mxu1  ;;  %1442 = vmatprep.mubr.msk.f32.mxu1 %vm1694_vm0, %v1693_v0 }
 0x1f1   : > { %v687_v13 = vmax.f32 %v664_v11, 0.0 }
 0x1f2   : > { %v668_v14 = vpop.f32.mrf.mxu1 }
 0x1f3   : > { %v669_v15 = vadd.f32 %v2017_v32, %v668_v14  ;;  %1443 = vmatmul.mubr.msk.f32.gmra.mxu1 %vm701_vm2, %v687_v13 }
 0x1f4   : > { %v1400_v16 = vpop.f32.mrf.mxu1  ;;  %1445 = vmatprep.mubr.msk.f32.mxu1 %vm1694_vm0, %v1693_v0 }
 0x1f5   : > { %v688_v17 = vmax.f32 %v669_v15, 0.0 }
 0x1f6   : > { %v673_v18 = vpop.f32.mrf.mxu1 }
 0x1f7   : > { %v674_v19 = vadd.f32 %v2017_v32, %v673_v18  ;;  %1446 = vmatmul.mubr.msk.f32.gmra.mxu1 %vm701_vm2, %v688_v17 }
 0x1f8   : > { %v1403_v20 = vpop.f32.mrf.mxu1  ;;  %1448 = vmatprep.mubr.msk.f32.mxu1 %vm1694_vm0, %v1693_v0 }
 0x1f9   : > { %v689_v21 = vmax.f32 %v674_v19, 0.0 }
 0x1fb   : > { %1449 = vmatmul.mubr.msk.f32.gmra.mxu1 %vm701_vm2, %v689_v21 }
 0x28b   : > { %v807_v23 = vpop.f32.mrf.mxu1 }
 0x28c   : > { %v808_v24 = vadd.f32 %v1184_v22, %v807_v23 }
 0x28d   : > { %v1414_v25 = vpop.f32.mrf.mxu1 }
 0x28e   : > { %871 = vst [vmem:[%s2070_s20] sm:$0xff] %v808_v24 }
 0x28f   : > { %v812_v26 = vpop.f32.mrf.mxu1 }
 0x290   : > { %v813_v27 = vadd.f32 %v1184_v22, %v812_v26 }
 0x291   : > { %v1417_v0 = vpop.f32.mrf.mxu1 }
 0x292   : > { %872 = vst [vmem:[%s2070_s20 + $0x8] sm:$0xff] %v813_v27 }
 0x293   : > { %v817_v28 = vpop.f32.mrf.mxu1 }
 0x294   : > { %v818_v29 = vadd.f32 %v1184_v22, %v817_v28 }
 0x295   : > { %v1420_v30 = vpop.f32.mrf.mxu1 }
 0x296   : > { %873 = vst [vmem:[%s2070_s20 + $0x10] sm:$0xff] %v818_v29 }
 0x297   : > { %v822_v31 = vpop.f32.mrf.mxu1 }
 0x298   : > { %v823_v32 = vadd.f32 %v1184_v22, %v822_v31 }
 0x299   : > { %v1423_v33 = vpop.f32.mrf.mxu1 }
 0x29a   : > { %874 = vst [vmem:[%s2070_s20 + $0x18] sm:$0xff] %v823_v32 }
 0x29b   : > { %v827_v34 = vpop.f32.mrf.mxu1 }
 0x29c   : > { %v828_v35 = vadd.f32 %v1184_v22, %v827_v34 }
 0x29d   : > { %v1426_v36 = vpop.f32.mrf.mxu1 }
 0x29e   : > { %875 = vst [vmem:[%s2070_s20 + $0x20] sm:$0xff] %v828_v35 }
 0x29f   : > { %v832_v37 = vpop.f32.mrf.mxu1 }
 0x2a0   : > { %v833_v38 = vadd.f32 %v1184_v22, %v832_v37 }
 0x2a1   : > { %v1429_v39 = vpop.f32.mrf.mxu1 }
 0x2a2   : > { %876 = vst [vmem:[%s2070_s20 + $0x28] sm:$0xff] %v833_v38 }
 0x2a3   : > { %v837_v40 = vpop.f32.mrf.mxu1 }
 0x2a4   : > { %v838_v41 = vadd.f32 %v1184_v22, %v837_v40 }
 0x2a5   : > { %v1432_v42 = vpop.f32.mrf.mxu1 }
 0x2a6   : > { %877 = vst [vmem:[%s2070_s20 + $0x30] sm:$0xff] %v838_v41 }
 0x2a7   : > { %v842_v43 = vpop.f32.mrf.mxu1 }
 0x2a8   : > { %v843_v44 = vadd.f32 %v1184_v22, %v842_v43 }
 0x2a9   : > { %v1435_v45 = vpop.f32.mrf.mxu1 }
 0x2aa   : > { %878 = vst [vmem:[%s2070_s20 + $0x38] sm:$0xff] %v843_v44 }
 0x2ab   : > { %v847_v46 = vpop.f32.mrf.mxu1 }
 0x2ac   : > { %v848_v47 = vadd.f32 %v1184_v22, %v847_v46 }
 0x2ad   : > { %v1438_v48 = vpop.f32.mrf.mxu1 }
 0x2ae   : > { %879 = vst [vmem:[%s2070_s20 + $0x40] sm:$0xff] %v848_v47 }
 0x2af   : > { %v852_v49 = vpop.f32.mrf.mxu1 }
 0x2b0   : > { %v853_v50 = vadd.f32 %v1184_v22, %v852_v49 }
 0x2b1   : > { %v1441_v51 = vpop.f32.mrf.mxu1 }
 0x2b2   : > { %880 = vst [vmem:[%s2070_s20 + $0x48] sm:$0xff] %v853_v50 }
 0x2b3   : > { %v857_v52 = vpop.f32.mrf.mxu1 }
 0x2b4   : > { %v858_v53 = vadd.f32 %v1184_v22, %v857_v52 }
 0x2b5   : > { %v1444_v54 = vpop.f32.mrf.mxu1 }
 0x2b6   : > { %881 = vst [vmem:[%s2070_s20 + $0x50] sm:$0xff] %v858_v53 }
 0x2b7   : > { %v862_v55 = vpop.f32.mrf.mxu1 }
 0x2b8   : > { %v863_v56 = vadd.f32 %v1184_v22, %v862_v55 }
 0x2b9   : > { %v1447_v57 = vpop.f32.mrf.mxu1 }
 0x2ba   : > { %882 = vst [vmem:[%s2070_s20 + $0x58] sm:$0xff] %v863_v56  ;;  %890 = sbr.rel (!%p1760_p4) target bundleno = 756 (0x2f4), region = 56 }
 0x2bb   : > { %v867_v58 = vpop.f32.mrf.mxu1 }
 0x2bc   : > { %v868_v59 = vadd.f32 %v1184_v22, %v867_v58 }
 0x2bd   : > { %v1450_v60 = vpop.f32.mrf.mxu1 }
 0x2be   : > { %883 = vst [vmem:[%s2070_s20 + $0x60] sm:$0xff] %v868_v59 }
 0x2bf   : > { %s2191_s24 = smov (!%p893_p6, %s892_s24), 13 }
 0x2c0   : > { %s1198_s29 = sshll.u32 %s2191_s24, 7 }
 0x2c1   : > { %p1201_p7 = scmp.eq.s32.totalorder %s1198_s29, 0 }
 0x2c2   : > { %1570 = sdivrem.u32 (!%p1201_p7), %s2191_s24, 13 }
 0x2c3   : > { %901 = sbr.rel (%p1201_p7) target bundleno = 756 (0x2f4), region = 60 }
 0x2cb   : > { %s2098_s9 = spop.drf %1570 }
 0x2cc   : > { %p1202_p4 = scmp.le.s32.totalorder %s2098_s9, 0 }
 0x2cd   : > { %s2184_s27 = smov (!%p1202_p4), %s2092_s26  ;;  %s2185_s16 = smov (!%p1202_p4), %s2070_s20 }
 0x2ce   : > { %1109 = sbr.rel (%p1202_p4) target bundleno = 731 (0x2db), region = 137  ;;  %s2107_s30 = smov (!%p1202_p4), 0  }
 0x2cf   : > { %s2109_s10 = smov (!%p1202_p4), 0  }
 0x2d3 LB: >> { %v990_v61 = vld [vmem:[%s1666_s16] sm:$0xff]  ;;  %v992_v62 = vld [vmem:[%s1666_s16 + $0x8] sm:$0xff]  ;;  %v994_v63 = vld [vmem:[%s1666_s16 + $0x10] sm:$0xff]  ;;  %s1016_s11 = sadd.s32 1, %s1670_s30  ;;  %s984_s10 = sadd.s32 1, %s1674_s10   ;;  %s1674_s10 = sphi %s2109_s10, %s984_s10   ;;  %s1670_s30 = sphi %s2107_s30, %s2186_s30   ;;  %s1666_s16 = sphi %s2185_s16, %s1021_s16   ;;  %s1662_s27 = sphi %s2184_s27, %s1022_s27  }
 0x2d4   : >> { %991 = vst [vmem:[%s1662_s27] sm:$0xff] %v990_v61  ;;  %993 = vst [vmem:[%s1662_s27 + $0x8] sm:$0xff] %v992_v62  ;;  %v996_v1 = vld [vmem:[%s1666_s16 + $0x18] sm:$0xff]  ;;  %v998_v2 = vld [vmem:[%s1666_s16 + $0x20] sm:$0xff]  ;;  %p1017_p8 = scmp.ge.s32.totalorder %s1016_s11, %s2098_s9  ;;  %p983_p9 = scmp.ge.s32.totalorder %s984_s10, %s2098_s9 }
 0x2d5   : >> { %995 = vst [vmem:[%s1662_s27 + $0x10] sm:$0xff] %v994_v63  ;;  %v1000_v3 = vld [vmem:[%s1666_s16 + $0x28] sm:$0xff]  ;;  %997 = vst [vmem:[%s1662_s27 + $0x18] sm:$0xff] %v996_v1  ;;  %v1002_v4 = vld [vmem:[%s1666_s16 + $0x30] sm:$0xff] }
 0x2d6   : >> { %999 = vst [vmem:[%s1662_s27 + $0x20] sm:$0xff] %v998_v2  ;;  %1001 = vst [vmem:[%s1662_s27 + $0x28] sm:$0xff] %v1000_v3  ;;  %v1004_v5 = vld [vmem:[%s1666_s16 + $0x38] sm:$0xff]  ;;  %v1006_v6 = vld [vmem:[%s1666_s16 + $0x40] sm:$0xff]  ;;  %s2193_s11 = smov (%p1017_p8, %s1016_s11), 0  ;;  %986 = sbr.rel (!%p983_p9) target bundleno = 723 (0x2d3), region = 143 }
 0x2d7   : >> { %1003 = vst [vmem:[%s1662_s27 + $0x30] sm:$0xff] %v1002_v4  ;;  %1005 = vst [vmem:[%s1662_s27 + $0x38] sm:$0xff] %v1004_v5  ;;  %v1008_v7 = vld [vmem:[%s1666_s16 + $0x48] sm:$0xff]  ;;  %v1010_v8 = vld [vmem:[%s1666_s16 + $0x50] sm:$0xff]  ;;  %s1019_s12 = smul.u32 104, %s2193_s11  ;;  %s2186_s30 = smov %s2193_s11 }
 0x2d8   : >> { %1007 = vst [vmem:[%s1662_s27 + $0x40] sm:$0xff] %v1006_v6  ;;  %v1012_v9 = vld [vmem:[%s1666_s16 + $0x58] sm:$0xff]  ;;  %1009 = vst [vmem:[%s1662_s27 + $0x48] sm:$0xff] %v1008_v7  ;;  %v1014_v10 = vld [vmem:[%s1666_s16 + $0x60] sm:$0xff] }
 0x2d9   : >> { %1011 = vst [vmem:[%s1662_s27 + $0x50] sm:$0xff] %v1010_v8  ;;  %1013 = vst [vmem:[%s1662_s27 + $0x58] sm:$0xff] %v1012_v9  ;;  %s1021_s16 = scalar_lea.vmem %s2070_s20, %s1019_s12 [#allocation4]  }
 0x2da   : >> { %1015 = vst [vmem:[%s1662_s27 + $0x60] sm:$0xff] %v1014_v10  ;;  %s1022_s27 = scalar_lea.vmem %s2092_s26, %s1019_s12  }
 0x2db PF: > { %1572 = sdivrem.u32 %s2191_s24, 13 }
 0x2dc   : > { %s1203_s13 = smul.u32 104, %s2098_s9 }
 0x2de   : > { %s1027_s14 = scalar_lea.vmem %s2070_s20, %s1203_s13 [#allocation4]   ;;  %s1029_s15 = scalar_lea.vmem %s2092_s26, %s1203_s13  }
 0x2e4   : > { %s1573_s17 = spop.drf %1572 }
 0x2e5   : > { %p1205_p10 = scmp.le.s32.totalorder %s1573_s17, 0 }
 0x2e6   : > { %s1676_s18 = smov (!%p1205_p10), %s1029_s15   ;;  %s1680_s19 = smov (!%p1205_p10), %s1027_s14  }
 0x2e7   : > { %1123 = sbr.rel (%p1205_p10) target bundleno = 756 (0x2f4), region = 148  ;;  %s1684_s21 = smov (!%p1205_p10), 0  }
 0x2e8   : > { %s1688_s22 = smov (!%p1205_p10), 0  }
 0x2ec LB: >> { %v1039_v11 = vld [vmem:[%s1682_s19] sm:$0xff]  ;;  %s1041_s23 = sadd.s32 1, %s1686_s21  ;;  %s1033_s22 = sadd.s32 1, %s1690_s22   ;;  %s1690_s22 = sphi %s1688_s22, %s1033_s22   ;;  %s1686_s21 = sphi %s1684_s21, %s1685_s21   ;;  %s1682_s19 = sphi %s1680_s19, %s1046_s19   ;;  %s1678_s18 = sphi %s1676_s18, %s1047_s18  }
 0x2ed   : >> { %1040 = vst [vmem:[%s1678_s18] sm:$0xff] %v1039_v11  ;;  %p1042_p11 = scmp.ge.s32.totalorder %s1041_s23, %s1573_s17  ;;  %p1032_p12 = scmp.ge.s32.totalorder %s1033_s22, %s1573_s17 }
 0x2ef   : >> { %s2195_s23 = smov (%p1042_p11, %s1041_s23), 0  ;;  %1035 = sbr.rel (!%p1032_p12) target bundleno = 748 (0x2ec), region = 154 }
 0x2f0   : >> { %s1206_s20 = sshll.u32 %s2195_s23, 3  ;;  %s1685_s21 = smov %s2195_s23  }
 0x2f1   : >> { %s1046_s19 = scalar_lea.vmem %s1027_s14, %s1206_s20 [#allocation4]   ;;  %s1047_s18 = scalar_lea.vmem %s1029_s15, %s1206_s20  }
 0x2f4 PF: > { %p15_p13 = scmp.ge.s32.totalorder %s1750_s28, 4   ;;  %s2187_s24 = smov %s1654_s25 }
 0x2f5   : > { %s2188_s25 = smov %s1758_s8  ;;  %s2189_s26 = smov %s1750_s28 }
 0x2f6   :  { %17 = sbr.rel (!%p15_p13) target bundleno = 2 (0x2), region = 165 }
 0x2fb   :  { %1063 = vsyncpa [#allocation3], 1 }
 0x2fc   :  { %1065 = vsyncpa [#allocation3 + $0x1], 1 }

</bundles_post_ra>
